<compile_context>
chip_gen: v7x
topology: tpu7x:2x2x1
jax: 0.10.0
libtpu: 0.0.40
codegen_flags: <defaults>
</compile_context>

<pallas_src>
import functools
import math

import jax
import jax.numpy as jnp
from jax.experimental import pallas as pl
from jax.experimental.pallas import tpu as pltpu


# ---- module config (defaults of the PyTorch module) -------------------------
NUM_ENCODING_FUNCTIONS = 6
INCLUDE_INPUT = True
LOG_SAMPLING = True
NORMALIZE = False
INPUT_DIM = 2
GAUSSIAN_PE = False

# Re-seed the double-angle recurrence with an exact sin/cos every N octaves so
# rounding error stays ~1e-6 for |x| <= O(1).
RESEED_PERIOD = 3


def _frequency_bands():
    """Python-float frequency bands matching torch.linspace semantics."""
    if LOG_SAMPLING:
        return [float(2.0 ** i) for i in range(NUM_ENCODING_FUNCTIONS)]
    lo, hi = 2.0 ** 0.0, 2.0 ** (NUM_ENCODING_FUNCTIONS - 1)
    if NUM_ENCODING_FUNCTIONS == 1:
        return [lo]
    step = (hi - lo) / (NUM_ENCODING_FUNCTIONS - 1)
    return [lo + step * i for i in range(NUM_ENCODING_FUNCTIONS)]


def _pe_kernel(x_ref, o_ref, *, freqs, norms, include_input, use_recurrence,
               reseed_period):
    """Lane-dense elementwise hot path.

    x_ref: (tile_rows, lane_cols) block in VMEM (flattened scalars).
    o_ref: (n_channels, tile_rows, lane_cols) block in VMEM, channel-major.
    """
    out_dt = o_ref.dtype
    x = x_ref[...].astype(jnp.float32)  # keep arithmetic f32 on all generations

    ch0 = 0
    if include_input:
        o_ref[0] = x.astype(out_dt)
        ch0 = 1

    def _store(i, s, c):
        sv = s if norms is None else norms[i] * s
        cv = c if norms is None else norms[i] * c
        o_ref[ch0 + 2 * i] = sv.astype(out_dt)       # full-lane store, no concat
        o_ref[ch0 + 2 * i + 1] = cv.astype(out_dt)

    if use_recurrence:
        # Valid because freqs[i+1] == 2 * freqs[i] (log_sampling powers of two).
        s = c = None
        for i, f in enumerate(freqs):
            if i % reseed_period == 0:
                t = x if f == 1.0 else x * f
                s, c = jnp.sin(t), jnp.cos(t)          # EUP
            else:
                s, c = 2.0 * s * c, 2.0 * c * c - 1.0  # cheap VPU double-angle
            _store(i, s, c)
    else:
        for i, f in enumerate(freqs):
            t = x if f == 1.0 else x * f
            _store(i, jnp.sin(t), jnp.cos(t))
    # NOTE: if a v7x bundle dump ever shows the vst slot binding, strip-mine this
    # body with an inner unrolled fori_loop over pl.ds row strips; not needed on
    # v5e/v6e where the kernel is HBM-writeback bound.


def _default_tile_rows():
    """v6e/v7x: 256 rows (32 MiB scoped-VMEM default); older gens: 128."""
    try:
        kind = jax.devices()[0].device_kind.lower()
    except Exception:  # pragma: no cover - CPU/interpret fallback
        return 128
    if any(g in kind for g in ("v2", "v3", "v4", "v5")):
        return 128
    return 256


def positional_encoding(x, *, tile_rows=None, lane_cols=512, out_dtype=None,
                        use_recurrence=True, channel_major=False):
    """x: (..., INPUT_DIM) float array.

    Default return: (..., INPUT_DIM*(1+2*F)) in torch.cat channel order.
    channel_major=True: returns (n_ch, ..., INPUT_DIM) with no relayout pass
    (review option (a) — consumer folds the permutation into its next matmul).
    out_dtype=jnp.bfloat16 halves HBM writeback when downstream tolerates it.
    """
    orig_shape = x.shape
    d = orig_shape[-1]
    assert d == INPUT_DIM
    n = math.prod(orig_shape[:-1]) if len(orig_shape) > 1 else 1
    m = n * d
    out_dtype = x.dtype if out_dtype is None else jnp.dtype(out_dtype)
    out_itemsize = jnp.dtype(out_dtype).itemsize

    freqs = _frequency_bands()
    norms = [1.0 / f for f in freqs] if NORMALIZE else None
    n_ch = (1 if INCLUDE_INPUT else 0) + 2 * len(freqs)
    out_d = d * n_ch
    use_recurrence = bool(use_recurrence and LOG_SAMPLING and len(freqs) > 0)

    # bf16 output blocks need a (16,128)-aligned sublane dim.
    sub = 16 if out_itemsize == 2 else 8

    if tile_rows is None:
        tile_rows = _default_tile_rows()
    tile_rows = max(sub, (tile_rows // sub) * sub)

    # ---- lane-dense view: pad the flat scalar stream once, shape (rows, C) ---
    # Shrink the lane width for tiny inputs so we don't pad excessively.
    while lane_cols > 128 and m <= (lane_cols // 2) * sub:
        lane_cols //= 2

    rows = pl.cdiv(m, lane_cols)
    rows_ceil = pl.cdiv(rows, sub) * sub
    if rows_ceil >= 2 * sub:
        # Guarantee >= 2 grid steps when possible (megacore sharding on v7x).
        half = max(sub, ((rows_ceil // 2) // sub) * sub)
        tr = min(tile_rows, half)
    else:
        tr = rows_ceil
    rows_pad = pl.cdiv(rows, tr) * tr
    m_pad = rows_pad * lane_cols

    x_flat = x.reshape(-1)
    if m_pad != m:
        x_flat = jnp.pad(x_flat, (0, m_pad - m))      # 1-D pad of the small input
    x2d = x_flat.reshape(rows_pad, lane_cols)

    kernel = functools.partial(
        _pe_kernel, freqs=freqs, norms=norms, include_input=INCLUDE_INPUT,
        use_recurrence=use_recurrence, reseed_period=RESEED_PERIOD)

    # Double-buffered in + out footprint; set the scoped-VMEM limit explicitly
    # (safe on every generation, incl. v7x's 64 MiB physical VMEM).
    in_tile_b = tr * lane_cols * x2d.dtype.itemsize
    out_tile_b = n_ch * tr * lane_cols * out_itemsize
    vmem_need = 2 * (in_tile_b + out_tile_b)
    vmem_limit = int(min(max(32 << 20, int(vmem_need * 1.5)), 56 << 20))

    cost = pl.CostEstimate(
        flops=30 * m_pad,
        transcendentals=(4 if use_recurrence else 2 * len(freqs)) * m_pad,
        bytes_accessed=m_pad * x2d.dtype.itemsize + n_ch * m_pad * out_itemsize)

    out3 = pl.pallas_call(
        kernel,
        out_shape=jax.ShapeDtypeStruct((n_ch, rows_pad, lane_cols), out_dtype),
        grid_spec=pltpu.PrefetchScalarGridSpec(
            num_scalar_prefetch=0,
            grid=(rows_pad // tr,),
            in_specs=[pl.BlockSpec((tr, lane_cols), lambda i: (i, 0))],
            out_specs=pl.BlockSpec((n_ch, tr, lane_cols), lambda i: (0, i, 0)),
        ),
        compiler_params=pltpu.CompilerParams(
            dimension_semantics=("parallel",),
            vmem_limit_bytes=vmem_limit),
        cost_estimate=cost,
    )(x2d)

    chan = out3.reshape(n_ch, m_pad)
    if m_pad != m:
        chan = chan[:, :m]

    if channel_major:
        # No interleaving relayout: consumer contracts over (n_ch, D) directly,
        # e.g. jnp.einsum('c...d,cdh->...h', enc, W.reshape(n_ch, D, H)).
        return chan.reshape(n_ch, *orig_shape)

    # Channel-major -> torch.cat order: out[..., c*D + dd] = channel c, coord dd.
    # (Kept as an XLA relayout; with bf16 out_dtype its traffic is halved.)
    out = chan.reshape(n_ch, n, d)
    out = jnp.transpose(out, (1, 0, 2)).reshape(*orig_shape[:-1], out_d)
    return out


def positional_encoding_ref(x):
    """Pure-JAX reference mirroring the PyTorch forward."""
    freqs = _frequency_bands()
    enc = [x] if INCLUDE_INPUT else []
    for i, f in enumerate(freqs):
        for func in (jnp.sin, jnp.cos):
            v = func(x * f)
            if NORMALIZE:
                v = (1.0 / f) * v
            enc.append(v)
    return enc[0] if len(enc) == 1 else jnp.concatenate(enc, axis=-1)


if __name__ == "__main__":
    key = jax.random.PRNGKey(0)
    # e.g. batch=2, 64 sample points, 2-D coordinates
    x = jax.random.uniform(key, (2, 64, INPUT_DIM), dtype=jnp.float32,
                           minval=-1.0, maxval=1.0)

    ref = positional_encoding_ref(x)
    expected_shape = (2, 64, INPUT_DIM * (1 + 2 * NUM_ENCODING_FUNCTIONS))
    assert ref.shape == expected_shape

    # Exact per-band sin/cos path (same math as the reference).
    out_exact = jax.block_until_ready(positional_encoding(x, use_recurrence=False))
    assert out_exact.shape == expected_shape
    assert jnp.allclose(out_exact, ref, atol=1e-5, rtol=1e-5)

    # Default fast path: double-angle recurrence with periodic exact re-seeding.
    out_fast = jax.block_until_ready(positional_encoding(x))
    assert out_fast.shape == expected_shape
    assert jnp.allclose(out_fast, ref, atol=3e-5, rtol=1e-5)

    # bf16 output (halves HBM writeback + relayout traffic when tolerated).
    out_bf16 = jax.block_until_ready(
        positional_encoding(x, out_dtype=jnp.bfloat16, use_recurrence=False))
    assert out_bf16.shape == expected_shape
    assert jnp.allclose(out_bf16.astype(jnp.float32), ref, atol=1.5e-2, rtol=1e-2)

    # Channel-major escape hatch (no interleaving relayout at all).
    out_cm = jax.block_until_ready(positional_encoding(x, channel_major=True))
    assert out_cm.shape == (1 + 2 * NUM_ENCODING_FUNCTIONS, 2, 64, INPUT_DIM)
    assert jnp.allclose(
        jnp.moveaxis(out_cm, 0, -2).reshape(expected_shape), ref,
        atol=3e-5, rtol=1e-5)

    print("KERNEL_OK")
</pallas_src>

<mosaic_0001>
module attributes {stable_mosaic.version = 11 : i64} {
  func.func @_pe_kernel(%arg0: i32, %arg1: memref<8x128xf32, #tpu.memory_space<vmem>>, %arg2: memref<13x8x128xf32, #tpu.memory_space<vmem>>) attributes {dimension_semantics = [#tpu.dimension_semantics<parallel>], iteration_bounds = array<i64: 1>, scalar_prefetch = 0 : i64, scratch_operands = 0 : i64, tpu.core_type = #tpu.core_type<tc>, window_params = [{transform_indices = @transform_0, window_bounds = array<i64: 8, 128>}, {transform_indices = @transform_1, window_bounds = array<i64: 13, 8, 128>}]} {
    %c0 = arith.constant 0 : index
    %c0_0 = arith.constant 0 : index
    %0 = vector.load %arg1[%c0, %c0_0] : memref<8x128xf32, #tpu.memory_space<vmem>>, vector<8x128xf32>
    %c0_1 = arith.constant 0 : index
    %c0_2 = arith.constant 0 : index
    %c0_3 = arith.constant 0 : index
    %1 = vector.load %arg2[%c0_1, %c0_2, %c0_3] : memref<13x8x128xf32, #tpu.memory_space<vmem>>, vector<1x8x128xf32>
    %2 = vector.shape_cast %1 : vector<1x8x128xf32> to vector<8x128xf32>
    %3 = vector.shape_cast %0 : vector<8x128xf32> to vector<1x8x128xf32>
    tpu.vector_store %arg2[%c0_1, %c0_2, %c0_3], %3 {strides = array<i32>} : memref<13x8x128xf32, #tpu.memory_space<vmem>>, vector<1x8x128xf32>,
    %4 = math.sin %0 : vector<8x128xf32>
    %5 = math.cos %0 : vector<8x128xf32>
    %c1 = arith.constant 1 : index
    %c0_4 = arith.constant 0 : index
    %c0_5 = arith.constant 0 : index
    %6 = vector.load %arg2[%c1, %c0_4, %c0_5] : memref<13x8x128xf32, #tpu.memory_space<vmem>>, vector<1x8x128xf32>
    %7 = vector.shape_cast %6 : vector<1x8x128xf32> to vector<8x128xf32>
    %8 = vector.shape_cast %4 : vector<8x128xf32> to vector<1x8x128xf32>
    tpu.vector_store %arg2[%c1, %c0_4, %c0_5], %8 {strides = array<i32>} : memref<13x8x128xf32, #tpu.memory_space<vmem>>, vector<1x8x128xf32>,
    %c2 = arith.constant 2 : index
    %c0_6 = arith.constant 0 : index
    %c0_7 = arith.constant 0 : index
    %9 = vector.load %arg2[%c2, %c0_6, %c0_7] : memref<13x8x128xf32, #tpu.memory_space<vmem>>, vector<1x8x128xf32>
    %10 = vector.shape_cast %9 : vector<1x8x128xf32> to vector<8x128xf32>
    %11 = vector.shape_cast %5 : vector<8x128xf32> to vector<1x8x128xf32>
    tpu.vector_store %arg2[%c2, %c0_6, %c0_7], %11 {strides = array<i32>} : memref<13x8x128xf32, #tpu.memory_space<vmem>>, vector<1x8x128xf32>,
    %cst = arith.constant 2.000000e+00 : f32
    %12 = vector.broadcast %cst : f32 to vector<8x128xf32>
    %13 = arith.mulf %0, %12 : vector<8x128xf32>
    %14 = math.sin %13 : vector<8x128xf32>
    %15 = math.cos %13 : vector<8x128xf32>
    %c3 = arith.constant 3 : index
    %c0_8 = arith.constant 0 : index
    %c0_9 = arith.constant 0 : index
    %16 = vector.load %arg2[%c3, %c0_8, %c0_9] : memref<13x8x128xf32, #tpu.memory_space<vmem>>, vector<1x8x128xf32>
    %17 = vector.shape_cast %16 : vector<1x8x128xf32> to vector<8x128xf32>
    %18 = vector.shape_cast %14 : vector<8x128xf32> to vector<1x8x128xf32>
    tpu.vector_store %arg2[%c3, %c0_8, %c0_9], %18 {strides = array<i32>} : memref<13x8x128xf32, #tpu.memory_space<vmem>>, vector<1x8x128xf32>,
    %c4 = arith.constant 4 : index
    %c0_10 = arith.constant 0 : index
    %c0_11 = arith.constant 0 : index
    %19 = vector.load %arg2[%c4, %c0_10, %c0_11] : memref<13x8x128xf32, #tpu.memory_space<vmem>>, vector<1x8x128xf32>
    %20 = vector.shape_cast %19 : vector<1x8x128xf32> to vector<8x128xf32>
    %21 = vector.shape_cast %15 : vector<8x128xf32> to vector<1x8x128xf32>
    tpu.vector_store %arg2[%c4, %c0_10, %c0_11], %21 {strides = array<i32>} : memref<13x8x128xf32, #tpu.memory_space<vmem>>, vector<1x8x128xf32>,
    %cst_12 = arith.constant 4.000000e+00 : f32
    %22 = vector.broadcast %cst_12 : f32 to vector<8x128xf32>
    %23 = arith.mulf %0, %22 : vector<8x128xf32>
    %24 = math.sin %23 : vector<8x128xf32>
    %25 = math.cos %23 : vector<8x128xf32>
    %c5 = arith.constant 5 : index
    %c0_13 = arith.constant 0 : index
    %c0_14 = arith.constant 0 : index
    %26 = vector.load %arg2[%c5, %c0_13, %c0_14] : memref<13x8x128xf32, #tpu.memory_space<vmem>>, vector<1x8x128xf32>
    %27 = vector.shape_cast %26 : vector<1x8x128xf32> to vector<8x128xf32>
    %28 = vector.shape_cast %24 : vector<8x128xf32> to vector<1x8x128xf32>
    tpu.vector_store %arg2[%c5, %c0_13, %c0_14], %28 {strides = array<i32>} : memref<13x8x128xf32, #tpu.memory_space<vmem>>, vector<1x8x128xf32>,
    %c6 = arith.constant 6 : index
    %c0_15 = arith.constant 0 : index
    %c0_16 = arith.constant 0 : index
    %29 = vector.load %arg2[%c6, %c0_15, %c0_16] : memref<13x8x128xf32, #tpu.memory_space<vmem>>, vector<1x8x128xf32>
    %30 = vector.shape_cast %29 : vector<1x8x128xf32> to vector<8x128xf32>
    %31 = vector.shape_cast %25 : vector<8x128xf32> to vector<1x8x128xf32>
    tpu.vector_store %arg2[%c6, %c0_15, %c0_16], %31 {strides = array<i32>} : memref<13x8x128xf32, #tpu.memory_space<vmem>>, vector<1x8x128xf32>,
    %cst_17 = arith.constant 8.000000e+00 : f32
    %32 = vector.broadcast %cst_17 : f32 to vector<8x128xf32>
    %33 = arith.mulf %0, %32 : vector<8x128xf32>
    %34 = math.sin %33 : vector<8x128xf32>
    %35 = math.cos %33 : vector<8x128xf32>
    %c7 = arith.constant 7 : index
    %c0_18 = arith.constant 0 : index
    %c0_19 = arith.constant 0 : index
    %36 = vector.load %arg2[%c7, %c0_18, %c0_19] : memref<13x8x128xf32, #tpu.memory_space<vmem>>, vector<1x8x128xf32>
    %37 = vector.shape_cast %36 : vector<1x8x128xf32> to vector<8x128xf32>
    %38 = vector.shape_cast %34 : vector<8x128xf32> to vector<1x8x128xf32>
    tpu.vector_store %arg2[%c7, %c0_18, %c0_19], %38 {strides = array<i32>} : memref<13x8x128xf32, #tpu.memory_space<vmem>>, vector<1x8x128xf32>,
    %c8 = arith.constant 8 : index
    %c0_20 = arith.constant 0 : index
    %c0_21 = arith.constant 0 : index
    %39 = vector.load %arg2[%c8, %c0_20, %c0_21] : memref<13x8x128xf32, #tpu.memory_space<vmem>>, vector<1x8x128xf32>
    %40 = vector.shape_cast %39 : vector<1x8x128xf32> to vector<8x128xf32>
    %41 = vector.shape_cast %35 : vector<8x128xf32> to vector<1x8x128xf32>
    tpu.vector_store %arg2[%c8, %c0_20, %c0_21], %41 {strides = array<i32>} : memref<13x8x128xf32, #tpu.memory_space<vmem>>, vector<1x8x128xf32>,
    %cst_22 = arith.constant 1.600000e+01 : f32
    %42 = vector.broadcast %cst_22 : f32 to vector<8x128xf32>
    %43 = arith.mulf %0, %42 : vector<8x128xf32>
    %44 = math.sin %43 : vector<8x128xf32>
    %45 = math.cos %43 : vector<8x128xf32>
    %c9 = arith.constant 9 : index
    %c0_23 = arith.constant 0 : index
    %c0_24 = arith.constant 0 : index
    %46 = vector.load %arg2[%c9, %c0_23, %c0_24] : memref<13x8x128xf32, #tpu.memory_space<vmem>>, vector<1x8x128xf32>
    %47 = vector.shape_cast %46 : vector<1x8x128xf32> to vector<8x128xf32>
    %48 = vector.shape_cast %44 : vector<8x128xf32> to vector<1x8x128xf32>
    tpu.vector_store %arg2[%c9, %c0_23, %c0_24], %48 {strides = array<i32>} : memref<13x8x128xf32, #tpu.memory_space<vmem>>, vector<1x8x128xf32>,
    %c10 = arith.constant 10 : index
    %c0_25 = arith.constant 0 : index
    %c0_26 = arith.constant 0 : index
    %49 = vector.load %arg2[%c10, %c0_25, %c0_26] : memref<13x8x128xf32, #tpu.memory_space<vmem>>, vector<1x8x128xf32>
    %50 = vector.shape_cast %49 : vector<1x8x128xf32> to vector<8x128xf32>
    %51 = vector.shape_cast %45 : vector<8x128xf32> to vector<1x8x128xf32>
    tpu.vector_store %arg2[%c10, %c0_25, %c0_26], %51 {strides = array<i32>} : memref<13x8x128xf32, #tpu.memory_space<vmem>>, vector<1x8x128xf32>,
    %cst_27 = arith.constant 3.200000e+01 : f32
    %52 = vector.broadcast %cst_27 : f32 to vector<8x128xf32>
    %53 = arith.mulf %0, %52 : vector<8x128xf32>
    %54 = math.sin %53 : vector<8x128xf32>
    %55 = math.cos %53 : vector<8x128xf32>
    %c11 = arith.constant 11 : index
    %c0_28 = arith.constant 0 : index
    %c0_29 = arith.constant 0 : index
    %56 = vector.load %arg2[%c11, %c0_28, %c0_29] : memref<13x8x128xf32, #tpu.memory_space<vmem>>, vector<1x8x128xf32>
    %57 = vector.shape_cast %56 : vector<1x8x128xf32> to vector<8x128xf32>
    %58 = vector.shape_cast %54 : vector<8x128xf32> to vector<1x8x128xf32>
    tpu.vector_store %arg2[%c11, %c0_28, %c0_29], %58 {strides = array<i32>} : memref<13x8x128xf32, #tpu.memory_space<vmem>>, vector<1x8x128xf32>,
    %c12 = arith.constant 12 : index
    %c0_30 = arith.constant 0 : index
    %c0_31 = arith.constant 0 : index
    %59 = vector.load %arg2[%c12, %c0_30, %c0_31] : memref<13x8x128xf32, #tpu.memory_space<vmem>>, vector<1x8x128xf32>
    %60 = vector.shape_cast %59 : vector<1x8x128xf32> to vector<8x128xf32>
    %61 = vector.shape_cast %55 : vector<8x128xf32> to vector<1x8x128xf32>
    tpu.vector_store %arg2[%c12, %c0_30, %c0_31], %61 {strides = array<i32>} : memref<13x8x128xf32, #tpu.memory_space<vmem>>, vector<1x8x128xf32>,
    return
  }
  func.func @transform_0(%arg0: i32) -> (i32, i32) {
    %c0_i32 = arith.constant 0 : i32
    %c0_i32_0 = arith.constant 0 : i32
    return %arg0, %c0_i32 : i32, i32
  }
  func.func @transform_1(%arg0: i32) -> (i32, i32, i32) {
    %c0_i32 = arith.constant 0 : i32
    %c0_i32_0 = arith.constant 0 : i32
    %c0_i32_1 = arith.constant 0 : i32
    return %c0_i32, %arg0, %c0_i32_0 : i32, i32, i32
  }
}

</mosaic_0001>

<bundles_post_ra>
// kernel: tpu_custom_call.1
= control target key start
LH: loop header
LB: loop body
LE: loop exit
PB: predicated region body
PF: predicated region fallthrough
CT: control target
= control target key end

     0   :  { %6 = vsyncpa [#allocation3], 0  ;;  %s2020_s0 = inlined_call_operand.hbm [shape: f32[8,128], index: 0, kind: input, shape index: {}]   ;;  %s2021_s1 = inlined_call_operand.hbm [shape: f32[13,8,128], index: 1, kind: output, shape index: {}]  }
   0x1   :  { %7 = vsyncpa [#allocation4], 0  ;;  %s1465_s6 = smov [#allocation2]   ;;  %s1417_s10 = scalar_lea.hbm %s2020_s0, 128 }
   0x2   :  { %s14_s7 = sshll.u32 %s1465_s6, 4  ;;  %p1418_p0 = scmp.ne.s32.totalorder %s2020_s0, %s1417_s10  ;;  %s15_s7 = int_to_ptr.vmem [resolvable:$true] %s14_s7 }
   0x3   :  { %p1421_p1 = scmp.lt.u32.totalorder %s1417_s10, %s2020_s0 }
   0x5   :  { %p1423_p2 = pnand %p1421_p1, %p1418_p0 }
   0x7   :  { %1426 = shalt.err (!%p1423_p2)
}
   0x8   :  { %s1427_s15 = scalar_lea.vmem %s15_s7, 128  ;;  %p1432_p4 = scmp.lt.s32.totalorder %s15_s7, %s15_s7 }
   0x9   :  { %p1428_p3 = scmp.ne.s32.totalorder %s15_s7, %s1427_s15  ;;  %p1433_p5 = scmp.lt.s32.totalorder %s1427_s15, %s1427_s15 }
   0xb   :  { %p1434_p6 = por %p1433_p5, %p1432_p4 }
   0xd   :  { %p1435_p7 = pnand %p1434_p6, %p1428_p3 }
   0xf   :  { %1438 = shalt.err (!%p1435_p7)
}
  0x10   :  { %17 = dma.hbm_to_vmem [thread:$0]  %s2020_s0, 128, %s15_s7, [#allocation3]  }
  0x11   :  { %1461 = dma.done.wait [#allocation3], 128  }
  0x12   :  { %1462 = vsyncadd [#allocation3], 4294967168  ;;  %v1497_v0 = vld [vmem:[#allocation2] sm:$0xff]  ;;  %v1466_v26 = vmov 683565275   ;;  %s1472_s0 = smov [#allocation5]  }
  0x13   :  { %22 = vst [vmem:[#allocation5] sm:$0xff] %v1497_v0  ;;  %v23_v1 = vand.u32 2147483647, %v1497_v0  ;;  %v26_v2 = vand.u32 2139095040, %v1497_v0  ;;  %v1503_v3 = vmul.f32 2.0, %v1497_v0  ;;  %v1506_v4 = vmul.f32 4.0, %v1497_v0 }
  0x14   :  { %v1467_v28 = vmov 2475754826   ;;  %v1468_v30 = vmov 2131351028   ;;  %v1469_v32 = vmov 2102212464  }
  0x15   :  { %v27_v5 = vshrl.u32 %v26_v2, 23  ;;  %v30_v6 = vand.u32 8388607, %v23_v1  ;;  %v235_v7 = vand.u32 2147483647, %v1503_v3  ;;  %v238_v8 = vand.u32 2139095040, %v1503_v3 }
  0x16   :  { %v450_v12 = vand.u32 2139095040, %v1506_v4  ;;  %v1470_v34 = vmov 920167782   ;;  %v1471_v41 = vmov 1326507024   ;;  %vm25_vm13 = vcmp.lt.s32.totalorder %v1497_v0, 0 }
  0x17   :  { %v1311_v9 = vadd.s32 4294967169, %v27_v5  ;;  %v239_v10 = vshrl.u32 %v238_v8, 23  ;;  %v242_v11 = vand.u32 8388607, %v235_v7  ;;  %v31_v14 = vor.u32 8388608, %v30_v6  ;;  %s1299_s18 = sshll.u32 %s1472_s0, 4  ;;  %s1300_s18 = int_to_ptr.vmem [resolvable:$true] %s1299_s18 }
  0x18   :  { %v451_v17 = vshrl.u32 %v450_v12, 23  ;;  %vm1599_vm14 = vcmp.le.f32.partialorder %v23_v1, 0.7853982  ;;  %s1439_s19 = scalar_lea.vmem %s1300_s18, 1664  ;;  %p1444_p9 = scmp.lt.s32.totalorder %s1300_s18, %s1300_s18 }
  0x19   :  { %v33_v13 = vadd.s32 1, %v1311_v9  ;;  %v1319_v15 = vadd.s32 4294967169, %v239_v10  ;;  %v243_v16 = vor.u32 8388608, %v242_v11  ;;  %v1515_v22 = vshll.u32 %v31_v14, 8  ;;  %p1440_p8 = scmp.ne.s32.totalorder %s1300_s18, %s1439_s19  ;;  %p1445_p10 = scmp.lt.s32.totalorder %s1439_s19, %s1439_s19 }
  0x1a   :  { %v1519_v24 = vadd.s32 4294967169, %v451_v17 }
  0x1b   :  { %vm34_vm0 = vcmp.gt.s32.totalorder %v33_v13, 0  ;;  %v245_v19 = vadd.s32 1, %v1319_v15  ;;  %v1517_v23 = vshll.u32 %v243_v16, 8  ;;  %p1446_p11 = por %p1445_p10, %p1444_p9 }
  0x1c   :  { %v35_v18 = vsel %vm34_vm0, %v33_v13, 0  ;;  %vm237_vm0 = vcmp.lt.s32.totalorder %v1503_v3, 0 }
  0x1d   :  { %v36_v20 = vshrl.u32 %v35_v18, 5  ;;  %v37_v21 = vand.u32 31, %v35_v18  ;;  %vm246_vm1 = vcmp.gt.s32.totalorder %v245_v19, 0  ;;  %p1447_p12 = pnand %p1446_p11, %p1440_p8 }
  0x1e   :  { %v247_v46 = vsel %vm246_vm1, %v245_v19, 0 }
  0x1f   :  { %v38_v25 = vsub.s32 32, %v37_v21  ;;  %v40_v27 = vshll.u32 %v1466_v26, %v37_v21  ;;  %v43_v29 = vshll.u32 %v1467_v28, %v37_v21  ;;  %v46_v31 = vshll.u32 %v1468_v30, %v37_v21 }
  0x20   :  { %v49_v33 = vshll.u32 %v1469_v32, %v37_v21  ;;  %v52_v35 = vshll.u32 %v1470_v34, %v37_v21  ;;  %vm55_vm2 = vcmp.lt.s32.totalorder %v36_v20, 1  ;;  %vm56_vm3 = vcmp.lt.s32.totalorder %v36_v20, 2 }
  0x21   :  { %v39_v36 = vshrl.u32 %v1466_v26, %v38_v25  ;;  %v41_v37 = vshrl.u32 %v1467_v28, %v38_v25  ;;  %v44_v38 = vshrl.u32 %v1468_v30, %v38_v25  ;;  %v47_v39 = vshrl.u32 %v1469_v32, %v38_v25 }
  0x22   :  { %v50_v40 = vshrl.u32 %v1470_v34, %v38_v25  ;;  %v53_v42 = vshrl.u32 %v1471_v41, %v38_v25  ;;  %vm57_vm4 = vcmp.lt.s32.totalorder %v36_v20, 3  ;;  %vm58_vm5 = vcmp.lt.s32.totalorder %v36_v20, 4 }
  0x23   :  { %v42_v43 = vor.u32 %v41_v37, %v40_v27  ;;  %v45_v44 = vor.u32 %v44_v38, %v43_v29  ;;  %v48_v45 = vor.u32 %v47_v39, %v46_v31  ;;  %v248_v49 = vshrl.u32 %v247_v46, 5 }
  0x24   :  { %v51_v47 = vor.u32 %v50_v40, %v49_v33  ;;  %v54_v48 = vor.u32 %v53_v42, %v52_v35  ;;  %v249_v50 = vand.u32 31, %v247_v46  ;;  %v457_v29 = vadd.s32 1, %v1519_v24 }
  0x25   :  { %v59_v51 = vsel %vm55_vm2, %v39_v36, %v42_v43  ;;  %v60_v52 = vsel %vm58_vm5, %v48_v45, 2102212464  ;;  %v63_v53 = vsel %vm55_vm2, %v42_v43, %v45_v44  ;;  %v67_v54 = vsel %vm55_vm2, %v45_v44, %v48_v45 }
  0x26   :  { %v61_v55 = vsel %vm57_vm4, %v45_v44, %v60_v52  ;;  %v64_v56 = vsel %vm58_vm5, %v51_v47, 920167782  ;;  %v68_v57 = vsel %vm58_vm5, %v54_v48, 1326507024  ;;  %v250_v58 = vsub.s32 32, %v249_v50 }
  0x27   :  { %v62_v59 = vsel %vm56_vm3, %v59_v51, %v61_v55  ;;  %v65_v60 = vsel %vm57_vm4, %v48_v45, %v64_v56  ;;  %v69_v61 = vsel %vm57_vm4, %v51_v47, %v68_v57  ;;  %v252_v62 = vshll.u32 %v1466_v26, %v249_v50 }
  0x28   :  { %v66_v63 = vsel %vm56_vm3, %v63_v53, %v65_v60  ;;  %v70_v2 = vsel %vm56_vm3, %v67_v54, %v69_v61  ;;  %v78_v5 = vmul.u32 %v1515_v22, %v62_v59  ;;  %v251_v6 = vshrl.u32 %v1466_v26, %v250_v58 }
  0x29   :  { %v1546_v8 = vmul.u32.u64.low %v1515_v22, %v70_v2  ;;  %v1547_v9 = vmul.u32.u64.high %v1515_v22, %v70_v2, %v1546_v8  ;;  %v1550_v10 = vmul.u32.u64.low %v1515_v22, %v66_v63  ;;  %v1551_v11 = vmul.u32.u64.high %v1515_v22, %v66_v63, %v1550_v10 }
  0x2a   :  { %v253_v12 = vshrl.u32 %v1467_v28, %v250_v58  ;;  %v255_v13 = vshll.u32 %v1467_v28, %v249_v50  ;;  %v256_v14 = vshrl.u32 %v1468_v30, %v250_v58  ;;  %v258_v15 = vshll.u32 %v1468_v30, %v249_v50 }
  0x2b   :  { %v259_v16 = vshrl.u32 %v1469_v32, %v250_v58  ;;  %v261_v17 = vshll.u32 %v1469_v32, %v249_v50  ;;  %v262_v18 = vshrl.u32 %v1470_v34, %v250_v58  ;;  %v264_v19 = vshll.u32 %v1470_v34, %v249_v50 }
  0x2c   :  { %v254_v20 = vor.u32 %v253_v12, %v252_v62  ;;  %v257_v21 = vor.u32 %v256_v14, %v255_v13  ;;  %v265_v22 = vshrl.u32 %v1471_v41, %v250_v58  ;;  %vm267_vm6 = vcmp.lt.s32.totalorder %v248_v49, 1 }
  0x2d   :  { %vm80_vm7 = vc.u32 %v1547_v9, %v1550_v10  ;;  %v81_v25 = vadd.s32 1, %v1551_v11  ;;  %v260_v27 = vor.u32 %v259_v16, %v258_v15  ;;  %v263_v31 = vor.u32 %v262_v18, %v261_v17 }
  0x2e   :  { %v266_v33 = vor.u32 %v265_v22, %v264_v19  ;;  %vm268_vm8 = vcmp.lt.s32.totalorder %v248_v49, 2  ;;  %vm269_vm9 = vcmp.lt.s32.totalorder %v248_v49, 3  ;;  %vm270_vm10 = vcmp.lt.s32.totalorder %v248_v49, 4 }
  0x2f   :  { %v82_v35 = vsel %vm80_vm7, %v81_v25, %v1551_v11  ;;  %v271_v36 = vsel %vm267_vm6, %v251_v6, %v254_v20  ;;  %v275_v37 = vsel %vm267_vm6, %v254_v20, %v257_v21  ;;  %v272_v39 = vsel %vm270_vm10, %v260_v27, 2102212464 }
  0x30   :  { %v83_v38 = vadd.s32 %v82_v35, %v78_v5  ;;  %v276_v40 = vsel %vm270_vm10, %v263_v31, 920167782  ;;  %v279_v42 = vsel %vm267_vm6, %v257_v21, %v260_v27  ;;  %v273_v43 = vsel %vm269_vm9, %v257_v21, %v272_v39 }
  0x31   :  { %v277_v44 = vsel %vm269_vm9, %v260_v27, %v276_v40  ;;  %v280_v45 = vsel %vm270_vm10, %v266_v33, 1326507024  ;;  %vm458_vm11 = vcmp.gt.s32.totalorder %v457_v29, 0  ;;  %v447_v48 = vand.u32 2147483647, %v1506_v4 }
  0x32   :  { %v84_v24 = vadd.s32 536870912, %v83_v38  ;;  %v278_v46 = vsel %vm268_vm8, %v275_v37, %v277_v44  ;;  %v281_v47 = vsel %vm269_vm9, %v263_v31, %v280_v45  ;;  %v274_v50 = vsel %vm268_vm8, %v271_v36, %v273_v43 }
  0x33   :  { %v282_v51 = vsel %vm268_vm8, %v279_v42, %v281_v47  ;;  %v1576_v52 = vmul.u32.u64.low %v1517_v23, %v278_v46  ;;  %v1577_v53 = vmul.u32.u64.high %v1517_v23, %v278_v46, %v1576_v52  ;;  %v459_v57 = vsel %vm458_vm11, %v457_v29, 0 }
  0x34   :  { %v85_v54 = vshrl.u32 %v84_v24, 30  ;;  %v1580_v55 = vmul.u32.u64.low %v1517_v23, %v282_v51  ;;  %v1581_v56 = vmul.u32.u64.high %v1517_v23, %v282_v51, %v1580_v55  ;;  %v461_v58 = vand.u32 31, %v459_v57 }
  0x35   :  { %v290_v60 = vmul.u32 %v1517_v23, %v274_v50  ;;  %v293_v61 = vadd.s32 1, %v1577_v53  ;;  %v454_v49 = vand.u32 8388607, %v447_v48  ;;  %v1589_v63 = vmul.f32 8.0, %v1497_v0 }
  0x36   :  { %v86_v59 = vshll.u32 %v85_v54, 30  ;;  %vm292_vm12 = vc.u32 %v1581_v56, %v1576_v52  ;;  %v109_v2 = vsub.s32 4, %v85_v54  ;;  %v462_v6 = vsub.s32 32, %v461_v58 }
  0x37   :  { %v294_v5 = vsel %vm292_vm12, %v293_v61, %v1577_v53  ;;  %v455_v23 = vor.u32 8388608, %v454_v49  ;;  %v659_v12 = vand.u32 2147483647, %v1589_v63  ;;  %v1595_v13 = vmul.f32 16.0, %v1497_v0 }
  0x38   :  { %v87_v62 = vsub.s32 %v83_v38, %v86_v59  ;;  %v295_v11 = vadd.s32 %v294_v5, %v290_v60  ;;  %v464_v16 = vshll.u32 %v1466_v26, %v461_v58  ;;  %v662_v17 = vand.u32 2139095040, %v1589_v63 }
  0x39   :  { %v110_v18 = vsel %vm25_vm13, %v109_v2, %v85_v54  ;;  %v465_v20 = vshrl.u32 %v1467_v28, %v462_v6  ;;  %v467_v21 = vshll.u32 %v1467_v28, %v461_v58  ;;  %v468_v25 = vshrl.u32 %v1468_v30, %v462_v6 }
  0x3a   :  { %v89_v8 = vsub.s32 0, %v87_v62  ;;  %v296_v19 = vadd.s32 536870912, %v295_v11  ;;  %v470_v1 = vshll.u32 %v1468_v30, %v461_v58  ;;  %v471_v27 = vshrl.u32 %v1469_v32, %v462_v6 }
  0x3b   :  { %v79_v29 = vadd.s32 %v1550_v10, %v1547_v9  ;;  %v1614_v33 = vshll.u32 %v455_v23, 8  ;;  %v1618_v35 = vand.u32 8388607, %v659_v12  ;;  %v460_v37 = vshrl.u32 %v459_v57, 5 }
  0x3c   :  { %v1312_v15 = vmin.u32 %v89_v8, %v87_v62  ;;  %v297_v31 = vshrl.u32 %v296_v19, 30  ;;  %v473_v38 = vshll.u32 %v1469_v32, %v461_v58  ;;  %v474_v39 = vshrl.u32 %v1470_v34, %v462_v6 }
  0x3d   :  { %v112_v40 = vsel %vm1599_vm14, 0, %v110_v18  ;;  %v1625_v42 = vadd.s32 %v1576_v52, %v1581_v56  ;;  %v663_v10 = vshrl.u32 %v662_v17, 23  ;;  %v466_v43 = vor.u32 %v465_v20, %v464_v16 }
  0x3e   :  { %v91_v22 = vclz %v1312_v15  ;;  %v298_v9 = vshll.u32 %v297_v31, 30  ;;  %v469_v44 = vor.u32 %v468_v25, %v467_v21  ;;  %v472_v45 = vor.u32 %v471_v27, %v470_v1 }
  0x3f   :  { %v476_v47 = vshll.u32 %v1470_v34, %v461_v58  ;;  %v477_v50 = vshrl.u32 %v1471_v41, %v462_v6  ;;  %v475_v52 = vor.u32 %v474_v39, %v473_v38  ;;  %v463_v56 = vshrl.u32 %v1466_v26, %v462_v6 }
  0x40   :  { %v1313_v36 = vadd.s32 4294967294, %v91_v22  ;;  %v1628_v46 = vsub.s32 %v295_v11, %v298_v9  ;;  %vm479_vm1 = vcmp.lt.s32.totalorder %v460_v37, 1  ;;  %vm482_vm2 = vcmp.lt.s32.totalorder %v460_v37, 4 }
  0x41   :  { %vm480_vm3 = vcmp.lt.s32.totalorder %v460_v37, 2  ;;  %v484_v60 = vsel %vm482_vm2, %v472_v45, 2102212464  ;;  %v321_v58 = vsub.s32 4, %v297_v31  ;;  %v478_v49 = vor.u32 %v477_v50, %v476_v47 }
  0x42   :  { %vm1314_vm15 = vcmp.lt.s32.totalorder %v1313_v36, 0  ;;  %v301_v55 = vsub.s32 0, %v1628_v46  ;;  %vm481_vm4 = vcmp.lt.s32.totalorder %v460_v37, 3  ;;  %vm1638_vm5 = vcmp.le.f32.partialorder %v235_v7, 0.7853982 }
  0x43   :  { %v94_v24 = vsel %vm1314_vm15, 0, %v1313_v36  ;;  %v487_v6 = vsel %vm479_vm1, %v466_v43, %v469_v44  ;;  %v488_v8 = vsel %vm482_vm2, %v475_v52, 920167782  ;;  %v116_v11 = vadd.s32 3, %v112_v40 }
  0x44   :  { %v95_v51 = vsub.s32 32, %v94_v24  ;;  %v96_v53 = vshll.u32 %v87_v62, %v94_v24  ;;  %v99_v54 = vsub.s32 4294967266, %v94_v24  ;;  %v1320_v61 = vmin.u32 %v301_v55, %v1628_v46 }
  0x45   :  { %v483_v15 = vsel %vm479_vm1, %v463_v56, %v466_v43  ;;  %v485_v16 = vsel %vm481_vm4, %v469_v44, %v484_v60  ;;  %v489_v19 = vsel %vm481_vm4, %v472_v45, %v488_v8  ;;  %v491_v20 = vsel %vm479_vm1, %v469_v44, %v472_v45 }
  0x46   :  { %v97_v57 = vshrl.u32 %v79_v29, %v95_v51  ;;  %v100_v59 = vadd.s32 127, %v99_v54  ;;  %v303_v23 = vclz %v1320_v61  ;;  %v322_v21 = vsel %vm237_vm0, %v321_v58, %v297_v31 }
  0x47   :  { %v490_v22 = vsel %vm480_vm3, %v487_v6, %v489_v19  ;;  %v492_v25 = vsel %vm482_vm2, %v478_v49, 1326507024  ;;  %v486_v38 = vsel %vm480_vm3, %v483_v15, %v485_v16  ;;  %v1335_v9 = vadd.s32 4294967169, %v663_v10 }
  0x48   :  { %v98_v2 = vor.u32 %v97_v57, %v96_v53  ;;  %v101_v62 = vshll.u32 %v100_v59, 23  ;;  %v1321_v7 = vadd.s32 4294967294, %v303_v23  ;;  %v493_v27 = vsel %vm481_vm4, %v475_v52, %v492_v25 }
  0x49   :  { %v1654_v29 = vmul.u32.u64.low %v1614_v33, %v490_v22  ;;  %v1655_v36 = vmul.u32.u64.high %v1614_v33, %v490_v22, %v1654_v29  ;;  %v494_v39 = vsel %vm480_vm3, %v491_v20, %v493_v27  ;;  %v669_v51 = vadd.s32 1, %v1335_v9 }
  0x4a   :  { %v102_v17 = vor.u32 4788187, %v101_v62  ;;  %v105_v18 = vcvt.s32.f32 %v98_v2  ;;  %vm1322_vm6 = vcmp.lt.s32.totalorder %v1321_v7, 0  ;;  %v1664_v54 = vand.u32 3, %v112_v40 }
  0x4b   :  { %v306_v44 = vsel %vm1322_vm6, 0, %v1321_v7  ;;  %v1660_v31 = vmul.u32.u64.low %v1614_v33, %v494_v39  ;;  %v1661_v45 = vmul.u32.u64.high %v1614_v33, %v494_v39, %v1660_v31  ;;  %v502_v52 = vmul.u32 %v1614_v33, %v486_v38 }
  0x4c   :  { %v103_v1 = vand.u32 2147483647, %v102_v17  ;;  %v307_v24 = vsub.s32 32, %v306_v44  ;;  %v308_v47 = vshll.u32 %v1628_v46, %v306_v44  ;;  %v311_v50 = vsub.s32 4294967266, %v306_v44 }
  0x4d   :  { %v505_v37 = vadd.s32 1, %v1655_v36  ;;  %v324_v56 = vsel %vm1638_vm5, 0, %v322_v21  ;;  %vm670_vm7 = vcmp.gt.s32.totalorder %v669_v51, 0  ;;  %v1673_v46 = vand.u32 3, %v116_v11 }
  0x4e   :  { %v106_v43 = vmul.f32 %v105_v18, %v103_v1  ;;  %v309_v10 = vshrl.u32 %v1625_v42, %v307_v24  ;;  %v312_v55 = vadd.s32 127, %v311_v50  ;;  %vm504_vm8 = vc.u32 %v1661_v45, %v1654_v29 }
  0x4f   :  { %v671_v40 = vsel %vm670_vm7, %v669_v51, 0  ;;  %v506_v42 = vsel %vm504_vm8, %v505_v37, %v1655_v36  ;;  %v328_v61 = vadd.s32 3, %v324_v56  ;;  %v667_v6 = vor.u32 8388608, %v1618_v35 }
  0x50   :  { %v107_v53 = vxor.u32 2147483648, %v106_v43  ;;  %v310_v59 = vor.u32 %v309_v10, %v308_v47  ;;  %v313_v60 = vshll.u32 %v312_v55, 23  ;;  %v507_v58 = vadd.s32 %v506_v42, %v502_v52 }
  0x51   :  { %v673_v49 = vand.u32 31, %v671_v40  ;;  %vm119_vm9 = vcmp.eq.s32.totalorder %v1673_v46, 0  ;;  %vm122_vm10 = vcmp.eq.s32.totalorder %v1673_v46, 2  ;;  %vm222_vm11 = vcmp.eq.s32.totalorder %v1664_v54, 0 }
  0x52   :  { %v108_v57 = vsel %vm25_vm13, %v107_v53, %v106_v43  ;;  %v314_v2 = vor.u32 4788187, %v313_v60  ;;  %v317_v62 = vcvt.s32.f32 %v310_v59  ;;  %v508_v8 = vadd.s32 536870912, %v507_v58 }
  0x53   :  { %v111_v33 = vsel %vm1599_vm14, %v1497_v0, %v108_v57  ;;  %v674_v11 = vsub.s32 32, %v673_v49  ;;  %vm225_vm12 = vcmp.eq.s32.totalorder %v1664_v54, 2  ;;  %vm118_vm13 = vcmp.lt.s32.totalorder %v1673_v46, 2 }
  0x54   :  { %1393 = vcosq.f32 %v111_v33  ;;  %v315_v14 = vand.u32 2147483647, %v314_v2  ;;  %vm221_vm14 = vcmp.lt.s32.totalorder %v1664_v54, 2  ;;  %v1687_v23 = vand.u32 3, %v328_v61 }
  0x55   :  { %1395 = vsinq.f32 %v111_v33  ;;  %v1689_v15 = vand.u32 3, %v324_v56  ;;  %v1691_v35 = vshrl.u32 %v508_v8, 30  ;;  %v874_v16 = vand.u32 2139095040, %v1595_v13 }
  0x56   :  { %vm115_vm15 = vweird.f32 %v1497_v0  ;;  %v318_v17 = vmul.f32 %v317_v62, %v315_v14  ;;  %v1696_v18 = vadd.s32 %v1654_v29, %v1661_v45  ;;  %v1698_v19 = vshrl.u32 %v671_v40, 5 }
  0x57   :  { %v1700_v20 = vshll.u32 %v667_v6, 8  ;;  %v510_v7 = vshll.u32 %v1691_v35, 30  ;;  %v676_v21 = vshll.u32 %v1466_v26, %v673_v49  ;;  %v677_v22 = vshrl.u32 %v1467_v28, %v674_v11 }
  0x58   :  { %v679_v25 = vshll.u32 %v1467_v28, %v673_v49  ;;  %v319_v1 = vxor.u32 2147483648, %v318_v17  ;;  %v680_v27 = vshrl.u32 %v1468_v30, %v674_v11  ;;  %v682_v36 = vshll.u32 %v1468_v30, %v673_v49 }
  0x59   :  { %v683_v29 = vshrl.u32 %v1469_v32, %v674_v11  ;;  %vm449_vm1 = vcmp.lt.s32.totalorder %v1506_v4, 0  ;;  %v1710_v38 = vsub.s32 %v507_v58, %v510_v7  ;;  %v685_v39 = vshll.u32 %v1469_v32, %v673_v49 }
  0x5a   :  { %v686_v9 = vshrl.u32 %v1470_v34, %v674_v11  ;;  %v1714_v43 = vshrl.u32 %v874_v16, 23  ;;  %v320_v44 = vsel %vm237_vm0, %v319_v1, %v318_v17  ;;  %v675_v31 = vshrl.u32 %v1466_v26, %v674_v11 }
  0x5b   :  { %v688_v45 = vshll.u32 %v1470_v34, %v673_v49  ;;  %v689_v24 = vshrl.u32 %v1471_v41, %v674_v11  ;;  %v323_v50 = vsel %vm1638_vm5, %v1503_v3, %v320_v44  ;;  %v513_v51 = vsub.s32 0, %v1710_v38 }
  0x5c   :  { %v533_v53 = vsub.s32 4, %v1691_v35  ;;  %v678_v52 = vor.u32 %v677_v22, %v676_v21  ;;  %1397 = vcosq.f32 %v323_v50  ;;  %v681_v55 = vor.u32 %v680_v27, %v679_v25 }
  0x5d   :  { %v684_v56 = vor.u32 %v683_v29, %v682_v36  ;;  %1399 = vsinq.f32 %v323_v50  ;;  %v1328_v40 = vmin.u32 %v513_v51, %v1710_v38  ;;  %v687_v33 = vor.u32 %v686_v9, %v685_v39 }
  0x5e   :  { %v1394_v47 = vpop.eup %1393  ;;  %vm334_vm0 = vcmp.eq.s32.totalorder %v1687_v23, 2  ;;  %vm437_vm2 = vcmp.eq.s32.totalorder %v1689_v15, 2  ;;  %v690_v60 = vor.u32 %v689_v24, %v688_v45  ;;  %vm691_vm3 = vcmp.lt.s32.totalorder %v1698_v19, 1 }
  0x5f   :  { %v1396_v37 = vpop.eup %1395  ;;  %v123_v10 = vxor.u32 2147483648, %v1394_v47  ;;  %vm331_vm4 = vcmp.eq.s32.totalorder %v1687_v23, 0  ;;  %vm434_vm5 = vcmp.eq.s32.totalorder %v1689_v15, 0  ;;  %vm1742_vm6 = vcmp.le.f32.partialorder %v447_v48, 0.7853982 }
  0x60   :  { %v120_v57 = vxor.u32 2147483648, %v1396_v37  ;;  %v515_v49 = vclz %v1328_v40  ;;  %vm694_vm7 = vcmp.lt.s32.totalorder %v1698_v19, 4  ;;  %vm433_vm8 = vcmp.lt.s32.totalorder %v1689_v15, 2 }
  0x61   :  { %v124_v59 = vsel %vm122_vm10, %v123_v10, %v1396_v37  ;;  %v227_v5 = vsel %vm225_vm12, %v123_v10, %v1396_v37  ;;  %vm693_vm10 = vcmp.lt.s32.totalorder %v1698_v19, 3  ;;  %v696_v46 = vsel %vm694_vm7, %v684_v56, 2102212464 }
  0x62   :  { %v121_v42 = vsel %vm119_vm9, %v1394_v47, %v120_v57  ;;  %v224_v61 = vsel %vm222_vm11, %v1394_v47, %v120_v57  ;;  %vm692_vm9 = vcmp.lt.s32.totalorder %v1698_v19, 2  ;;  %vm327_vm11 = vweird.f32 %v1503_v3 }
  0x63   :  { %v125_v2 = vsel %vm118_vm13, %v121_v42, %v124_v59  ;;  %v228_v62 = vsel %vm221_vm14, %v224_v61, %v227_v5  ;;  %v1329_v8 = vadd.s32 4294967294, %v515_v49  ;;  %v534_v54 = vsel %vm449_vm1, %v533_v53, %v1691_v35 }
  0x64   :  { %v126_v48 = vsel %vm115_vm15, nan, %v125_v2  ;;  %v229_v6 = vsel %vm115_vm15, nan, %v228_v62  ;;  %v699_v11 = vsel %vm691_vm3, %v678_v52, %v681_v55  ;;  %v700_v14 = vsel %vm694_vm7, %v687_v33, 920167782 }
  0x65   :  { %231 = vst [vmem:[#allocation5 + $0x8] sm:$0xff] %v126_v48  ;;  %233 = vst [vmem:[#allocation5 + $0x10] sm:$0xff] %v229_v6  ;;  %v703_v16 = vsel %vm691_vm3, %v681_v55, %v684_v56  ;;  %vm1330_vm12 = vcmp.lt.s32.totalorder %v1329_v8, 0  ;;  %v695_v17 = vsel %vm691_vm3, %v675_v31, %v678_v52  ;;  %v701_v7 = vsel %vm693_vm10, %v684_v56, %v700_v14 }
  0x66   :  { %v704_v21 = vsel %vm694_vm7, %v690_v60, 1326507024  ;;  %v518_v35 = vsel %vm1330_vm12, 0, %v1329_v8  ;;  %v697_v22 = vsel %vm693_vm10, %v681_v55, %v696_v46  ;;  %v702_v25 = vsel %vm692_vm9, %v699_v11, %v701_v7  ;;  %v1398_v9 = vpop.eup %1397 }
  0x67   :  { %v705_v1 = vsel %vm693_vm10, %v687_v33, %v704_v21  ;;  %v519_v27 = vsub.s32 32, %v518_v35  ;;  %v520_v36 = vshll.u32 %v1710_v38, %v518_v35  ;;  %v523_v29 = vsub.s32 4294967266, %v518_v35  ;;  %v1400_v47 = vpop.eup %1399 }
  0x68   :  { %v706_v39 = vsel %vm692_vm9, %v703_v16, %v705_v1  ;;  %v1790_v45 = vmul.u32.u64.low %v1700_v20, %v702_v25  ;;  %v1791_v24 = vmul.u32.u64.high %v1700_v20, %v702_v25, %v1790_v45  ;;  %v335_v50 = vxor.u32 2147483648, %v1398_v9 }
  0x69   :  { %v1786_v44 = vmul.u32.u64.low %v1700_v20, %v706_v39  ;;  %v1787_v31 = vmul.u32.u64.high %v1700_v20, %v706_v39, %v1786_v44  ;;  %v521_v51 = vshrl.u32 %v1696_v18, %v519_v27  ;;  %v524_v53 = vadd.s32 127, %v523_v29 }
  0x6a   :  { %v698_v38 = vsel %vm692_vm9, %v695_v17, %v697_v22  ;;  %vm330_vm13 = vcmp.lt.s32.totalorder %v1687_v23, 2  ;;  %v332_v52 = vxor.u32 2147483648, %v1400_v47  ;;  %v536_v37 = vsel %vm1742_vm6, 0, %v534_v54 }
  0x6b   :  { %v1343_v10 = vadd.s32 4294967169, %v1714_v43  ;;  %v336_v55 = vsel %vm334_vm0, %v335_v50, %v1400_v47  ;;  %v439_v56 = vsel %vm437_vm2, %v335_v50, %v1400_v47  ;;  %v522_v57 = vor.u32 %v521_v51, %v520_v36 }
  0x6c   :  { %v525_v18 = vshll.u32 %v524_v53, 23  ;;  %v333_v19 = vsel %vm331_vm4, %v1398_v9, %v332_v52  ;;  %v436_v40 = vsel %vm434_vm5, %v1398_v9, %v332_v52  ;;  %v714_v33 = vmul.u32 %v1700_v20, %v698_v38 }
  0x6d   :  { %vm716_vm14 = vc.u32 %v1787_v31, %v1790_v45  ;;  %v337_v43 = vsel %vm330_vm13, %v333_v19, %v336_v55  ;;  %v440_v59 = vsel %vm433_vm8, %v436_v40, %v439_v56  ;;  %v529_v60 = vcvt.s32.f32 %v522_v57 }
  0x6e   :  { %v526_v5 = vor.u32 4788187, %v525_v18  ;;  %v338_v42 = vsel %vm327_vm11, nan, %v337_v43  ;;  %v441_v23 = vsel %vm327_vm11, nan, %v440_v59  ;;  %v717_v61 = vadd.s32 1, %v1791_v24 }
  0x6f   :  { %443 = vst [vmem:[#allocation5 + $0x18] sm:$0xff] %v338_v42  ;;  %445 = vst [vmem:[#allocation5 + $0x20] sm:$0xff] %v441_v23  ;;  %v881_v49 = vadd.s32 1, %v1343_v10  ;;  %v540_v2 = vadd.s32 3, %v536_v37  ;;  %v871_v15 = vand.u32 2147483647, %v1595_v13 }
  0x70   :  { %v527_v20 = vand.u32 2147483647, %v526_v5  ;;  %v718_v62 = vsel %vm716_vm14, %v717_v61, %v1791_v24  ;;  %v1822_v48 = vmul.f32 32.0, %v1497_v0  ;;  %v1827_v17 = vand.u32 3, %v536_v37 }
  0x71   :  { %v719_v8 = vadd.s32 %v718_v62, %v714_v33  ;;  %vm882_vm15 = vcmp.gt.s32.totalorder %v881_v49, 0  ;;  %v1825_v16 = vand.u32 3, %v540_v2  ;;  %v878_v7 = vand.u32 8388607, %v871_v15 }
  0x72   :  { %v530_v6 = vmul.f32 %v529_v60, %v527_v20  ;;  %v883_v46 = vsel %vm882_vm15, %v881_v49, 0  ;;  %v1083_v3 = vand.u32 2147483647, %v1822_v48  ;;  %v1086_v22 = vand.u32 2139095040, %v1822_v48 }
  0x73   :  { %v720_v11 = vadd.s32 536870912, %v719_v8  ;;  %v885_v14 = vand.u32 31, %v883_v46  ;;  %v879_v50 = vor.u32 8388608, %v878_v7  ;;  %v884_v51 = vshrl.u32 %v883_v46, 5 }
  0x74   :  { %v531_v54 = vxor.u32 2147483648, %v530_v6  ;;  %v1090_v36 = vand.u32 8388607, %v1083_v3  ;;  %vm546_vm0 = vcmp.eq.s32.totalorder %v1825_v16, 2  ;;  %vm646_vm2 = vcmp.eq.s32.totalorder %v1827_v17, 0 }
  0x75   :  { %v1833_v21 = vshrl.u32 %v720_v11, 30  ;;  %v886_v35 = vsub.s32 32, %v885_v14  ;;  %v888_v1 = vshll.u32 %v1466_v26, %v885_v14  ;;  %v891_v27 = vshll.u32 %v1467_v28, %v885_v14 }
  0x76   :  { %v532_v0 = vsel %vm449_vm1, %v531_v54, %v530_v6  ;;  %v894_v39 = vshll.u32 %v1468_v30, %v885_v14  ;;  %v897_v9 = vshll.u32 %v1469_v32, %v885_v14  ;;  %vm543_vm1 = vcmp.eq.s32.totalorder %v1825_v16, 0 }
  0x77   :  { %v535_v25 = vsel %vm1742_vm6, %v1506_v4, %v532_v0  ;;  %v722_v29 = vshll.u32 %v1833_v21, 30  ;;  %v889_v44 = vshrl.u32 %v1467_v28, %v886_v35  ;;  %v892_v58 = vshrl.u32 %v1468_v30, %v886_v35 }
  0x78   :  { %1401 = vcosq.f32 %v535_v25  ;;  %v895_v24 = vshrl.u32 %v1469_v32, %v886_v35  ;;  %v898_v53 = vshrl.u32 %v1470_v34, %v886_v35  ;;  %vm649_vm3 = vcmp.eq.s32.totalorder %v1827_v17, 2 }
  0x79   :  { %1403 = vsinq.f32 %v535_v25  ;;  %v1849_v47 = vsub.s32 %v719_v8, %v722_v29  ;;  %v900_v38 = vshll.u32 %v1470_v34, %v885_v14  ;;  %v1087_v52 = vshrl.u32 %v1086_v22, 23 }
  0x7a   :  { %vm542_vm4 = vcmp.lt.s32.totalorder %v1825_v16, 2  ;;  %vm645_vm5 = vcmp.lt.s32.totalorder %v1827_v17, 2  ;;  %v887_v10 = vshrl.u32 %v1466_v26, %v886_v35  ;;  %v890_v55 = vor.u32 %v889_v44, %v888_v1 }
  0x7b   :  { %v725_v37 = vsub.s32 0, %v1849_v47  ;;  %v1091_v56 = vor.u32 8388608, %v1090_v36  ;;  %vm539_vm6 = vweird.f32 %v1506_v4  ;;  %v893_v57 = vor.u32 %v892_v58, %v891_v27 }
  0x7c   :  { %v896_v18 = vor.u32 %v895_v24, %v894_v39  ;;  %v899_v19 = vor.u32 %v898_v53, %v897_v9  ;;  %v901_v40 = vshrl.u32 %v1471_v41, %v886_v35  ;;  %v715_v33 = vadd.s32 %v1790_v45, %v1787_v31 }
  0x7d   :  { %v1336_v43 = vmin.u32 %v725_v37, %v1849_v47  ;;  %vm903_vm7 = vcmp.lt.s32.totalorder %v884_v51, 1  ;;  %v1866_v59 = vshll.u32 %v879_v50, 8  ;;  %vm905_vm8 = vcmp.lt.s32.totalorder %v884_v51, 3 }
  0x7e   :  { %v902_v5 = vor.u32 %v901_v40, %v900_v38  ;;  %vm906_vm9 = vcmp.lt.s32.totalorder %v884_v51, 4  ;;  %v1351_v60 = vadd.s32 4294967169, %v1087_v52  ;;  %vm904_vm10 = vcmp.lt.s32.totalorder %v884_v51, 2 }
  0x7f   :  { %v727_v42 = vclz %v1336_v43  ;;  %v907_v23 = vsel %vm903_vm7, %v887_v10, %v890_v55  ;;  %v1868_v61 = vshll.u32 %v1091_v56, 8  ;;  %v908_v20 = vsel %vm906_vm9, %v896_v18, 2102212464 }
  0x80   :  { %v911_v49 = vsel %vm903_vm7, %v890_v55, %v893_v57  ;;  %v912_v2 = vsel %vm906_vm9, %v899_v19, 920167782  ;;  %v915_v62 = vsel %vm903_vm7, %v893_v57, %v896_v18  ;;  %vm661_vm11 = vcmp.lt.s32.totalorder %v1589_v63, 0 }
  0x81   :  { %v1337_v31 = vadd.s32 4294967294, %v727_v42  ;;  %v909_v45 = vsel %vm905_vm8, %v893_v57, %v908_v20  ;;  %v913_v8 = vsel %vm905_vm8, %v896_v18, %v912_v2  ;;  %v916_v46 = vsel %vm906_vm9, %v902_v5, 1326507024 }
  0x82   :  { %v1402_v6 = vpop.eup %1401  ;;  %v745_v14 = vsub.s32 4, %v1833_v21  ;;  %v910_v7 = vsel %vm904_vm10, %v907_v23, %v909_v45  ;;  %v917_v0 = vsel %vm905_vm8, %v899_v19, %v916_v46  ;;  %v914_v22 = vsel %vm904_vm10, %v911_v49, %v913_v8 }
  0x83   :  { %v1404_v54 = vpop.eup %1403  ;;  %v547_v11 = vxor.u32 2147483648, %v1402_v6  ;;  %vm1338_vm12 = vcmp.lt.s32.totalorder %v1337_v31, 0  ;;  %v918_v25 = vsel %vm904_vm10, %v915_v62, %v917_v0  ;;  %v1093_v29 = vadd.s32 1, %v1351_v60 }
  0x84   :  { %v544_v35 = vxor.u32 2147483648, %v1404_v54  ;;  %v730_v36 = vsel %vm1338_vm12, 0, %v1337_v31  ;;  %vm1903_vm14 = vcmp.le.f32.partialorder %v659_v12, 0.7853982  ;;  %v746_v40 = vsel %vm661_vm11, %v745_v14, %v1833_v21 }
  0x85   :  { %v548_v1 = vsel %vm546_vm0, %v547_v11, %v1404_v54  ;;  %v651_v27 = vsel %vm649_vm3, %v547_v11, %v1404_v54  ;;  %v731_v44 = vsub.s32 32, %v730_v36  ;;  %v732_v58 = vshll.u32 %v1849_v47, %v730_v36 }
  0x86   :  { %v545_v39 = vsel %vm543_vm1, %v1402_v6, %v544_v35  ;;  %v648_v9 = vsel %vm646_vm2, %v1402_v6, %v544_v35  ;;  %v735_v51 = vsub.s32 4294967266, %v730_v36  ;;  %vm1094_vm13 = vcmp.gt.s32.totalorder %v1093_v29, 0 }
  0x87   :  { %v549_v24 = vsel %vm542_vm4, %v545_v39, %v548_v1  ;;  %v652_v50 = vsel %vm645_vm5, %v648_v9, %v651_v27  ;;  %v733_v52 = vshrl.u32 %v715_v33, %v731_v44  ;;  %v1095_v37 = vsel %vm1094_vm13, %v1093_v29, 0 }
  0x88   :  { %v550_v53 = vsel %vm539_vm6, nan, %v549_v24  ;;  %v653_v38 = vsel %vm539_vm6, nan, %v652_v50  ;;  %v736_v10 = vadd.s32 127, %v735_v51  ;;  %v1899_v55 = vshrl.u32 %v1095_v37, 5 }
  0x89   :  { %655 = vst [vmem:[#allocation5 + $0x28] sm:$0xff] %v550_v53  ;;  %657 = vst [vmem:[#allocation5 + $0x30] sm:$0xff] %v653_v38  ;;  %v1896_v47 = vmul.u32.u64.low %v1866_v59, %v918_v25  ;;  %v1897_v16 = vmul.u32.u64.high %v1866_v59, %v918_v25, %v1896_v47  ;;  %v734_v56 = vor.u32 %v733_v52, %v732_v58  ;;  %v1097_v18 = vand.u32 31, %v1095_v37 }
  0x8a   :  { %v1908_v4 = vmul.u32.u64.low %v1866_v59, %v914_v22  ;;  %v1909_v57 = vmul.u32.u64.high %v1866_v59, %v914_v22, %v1908_v4  ;;  %v737_v19 = vshll.u32 %v736_v10, 23  ;;  %v926_v33 = vmul.u32 %v1866_v59, %v910_v7 }
  0x8b   :  { %vm1115_vm15 = vcmp.lt.s32.totalorder %v1899_v55, 1  ;;  %v1098_v12 = vsub.s32 32, %v1097_v18  ;;  %v1100_v43 = vshll.u32 %v1466_v26, %v1097_v18  ;;  %v1103_v5 = vshll.u32 %v1467_v28, %v1097_v18 }
  0x8c   :  { %vm1117_vm1 = vcmp.lt.s32.totalorder %v1899_v55, 3  ;;  %v738_v60 = vor.u32 4788187, %v737_v19  ;;  %v741_v42 = vcvt.s32.f32 %v734_v56  ;;  %vm928_vm0 = vc.u32 %v1897_v16, %v1908_v4 }
  0x8d   :  { %v1106_v23 = vshll.u32 %v1468_v30, %v1097_v18  ;;  %v929_v21 = vadd.s32 1, %v1909_v57  ;;  %v1099_v59 = vshrl.u32 %v1466_v26, %v1098_v12  ;;  %v1101_v20 = vshrl.u32 %v1467_v28, %v1098_v12 }
  0x8e   :  { %v1104_v49 = vshrl.u32 %v1468_v30, %v1098_v12  ;;  %v739_v2 = vand.u32 2147483647, %v738_v60  ;;  %v1107_v62 = vshrl.u32 %v1469_v32, %v1098_v12  ;;  %v1109_v6 = vshll.u32 %v1469_v32, %v1097_v18 }
  0x8f   :  { %v1110_v31 = vshrl.u32 %v1470_v34, %v1098_v12  ;;  %v930_v45 = vsel %vm928_vm0, %v929_v21, %v1909_v57  ;;  %v1102_v8 = vor.u32 %v1101_v20, %v1100_v43  ;;  %v1112_v54 = vshll.u32 %v1470_v34, %v1097_v18 }
  0x90   :  { %v1105_v46 = vor.u32 %v1104_v49, %v1103_v5  ;;  %v742_v11 = vmul.f32 %v741_v42, %v739_v2  ;;  %v931_v14 = vadd.s32 %v930_v45, %v926_v33  ;;  %v1108_v26 = vor.u32 %v1107_v62, %v1106_v23 }
  0x91   :  { %v1111_v7 = vor.u32 %v1110_v31, %v1109_v6  ;;  %v1113_v28 = vshrl.u32 %v1471_v41, %v1098_v12  ;;  %vm1116_vm2 = vcmp.lt.s32.totalorder %v1899_v55, 2  ;;  %vm1118_vm3 = vcmp.lt.s32.totalorder %v1899_v55, 4 }
  0x92   :  { %v1123_v30 = vsel %vm1115_vm15, %v1102_v8, %v1105_v46  ;;  %v743_v32 = vxor.u32 2147483648, %v742_v11  ;;  %v748_v0 = vsel %vm1903_vm14, 0, %v746_v40  ;;  %v932_v35 = vadd.s32 536870912, %v931_v14 }
  0x93   :  { %v1124_v22 = vsel %vm1118_vm3, %v1111_v7, 920167782  ;;  %v1114_v34 = vor.u32 %v1113_v28, %v1112_v54  ;;  %v1119_v25 = vsel %vm1115_vm15, %v1099_v59, %v1102_v8  ;;  %v1120_v1 = vsel %vm1118_vm3, %v1108_v26, 2102212464 }
  0x94   :  { %v1125_v41 = vsel %vm1117_vm1, %v1108_v26, %v1124_v22  ;;  %v744_v27 = vsel %vm661_vm11, %v743_v32, %v742_v11  ;;  %v1945_v36 = vshrl.u32 %v932_v35, 30  ;;  %v1127_v39 = vsel %vm1115_vm15, %v1105_v46, %v1108_v26 }
  0x95   :  { %v1126_v29 = vsel %vm1116_vm2, %v1123_v30, %v1125_v41  ;;  %v747_v9 = vsel %vm1903_vm14, %v1589_v63, %v744_v27  ;;  %v1128_v44 = vsel %vm1118_vm3, %v1114_v34, 1326507024  ;;  %v1121_v51 = vsel %vm1117_vm1, %v1105_v46, %v1120_v1 }
  0x96   :  { %v1955_v58 = vmul.u32.u64.low %v1868_v61, %v1126_v29  ;;  %v1956_v24 = vmul.u32.u64.high %v1868_v61, %v1126_v29, %v1955_v58  ;;  %1405 = vcosq.f32 %v747_v9  ;;  %v934_v50 = vshll.u32 %v1945_v36, 30 }
  0x97   :  { %v1129_v53 = vsel %vm1117_vm1, %v1111_v7, %v1128_v44  ;;  %1407 = vsinq.f32 %v747_v9  ;;  %v752_v52 = vadd.s32 3, %v748_v0  ;;  %v1122_v17 = vsel %vm1116_vm2, %v1119_v25, %v1121_v51 }
  0x98   :  { %v1130_v38 = vsel %vm1116_vm2, %v1127_v39, %v1129_v53  ;;  %v935_v37 = vsub.s32 %v931_v14, %v934_v50  ;;  %v856_v57 = vand.u32 3, %v748_v0  ;;  %v1141_v18 = vadd.s32 1, %v1956_v24 }
  0x99   :  { %v1967_v10 = vmul.u32.u64.low %v1868_v61, %v1130_v38  ;;  %v1968_v47 = vmul.u32.u64.high %v1868_v61, %v1130_v38, %v1967_v10  ;;  %v753_v19 = vand.u32 3, %v752_v52  ;;  %v1138_v33 = vmul.u32 %v1868_v61, %v1122_v17 }
  0x9a   :  { %v937_v56 = vsub.s32 0, %v935_v37  ;;  %vm857_vm5 = vcmp.lt.s32.totalorder %v856_v57, 2  ;;  %vm861_vm7 = vcmp.eq.s32.totalorder %v856_v57, 2  ;;  %vm858_vm10 = vcmp.eq.s32.totalorder %v856_v57, 0 }
  0x9b   :  { %vm1140_vm4 = vc.u32 %v1968_v47, %v1955_v58  ;;  %vm758_vm6 = vcmp.eq.s32.totalorder %v753_v19, 2  ;;  %vm754_vm8 = vcmp.lt.s32.totalorder %v753_v19, 2  ;;  %vm755_vm9 = vcmp.eq.s32.totalorder %v753_v19, 0 }
  0x9c   :  { %v1344_v40 = vmin.u32 %v937_v56, %v935_v37  ;;  %v1142_v43 = vsel %vm1140_vm4, %v1141_v18, %v1956_v24  ;;  %v927_v61 = vadd.s32 %v1908_v4, %v1897_v16  ;;  %vm751_vm12 = vweird.f32 %v1589_v63 }
  0x9d   :  { %v1143_v60 = vadd.s32 %v1142_v43, %v1138_v33  ;;  %v957_v34 = vsub.s32 4, %v1945_v36  ;;  %vm873_vm13 = vcmp.lt.s32.totalorder %v1595_v13, 0  ;;  %vm872_vm14 = vcmp.le.f32.partialorder %v871_v15, 0.7853982 }
  0x9e   :  { %v939_v12 = vclz %v1344_v40  ;;  %v1139_v44 = vadd.s32 %v1955_v58, %v1968_v47  ;;  %vm1992_vm1 = vcmp.le.f32.partialorder %v1083_v3, 0.7853982  ;;  %vm1085_vm3 = vcmp.lt.s32.totalorder %v1822_v48, 0 }
  0x9f   :  { %v1144_v59 = vadd.s32 536870912, %v1143_v60  ;;  %v958_v29 = vsel %vm873_vm13, %v957_v34, %v1945_v36 }
  0xa0   :  { %v1406_v5 = vpop.eup %1405  ;;  %v1345_v55 = vadd.s32 4294967294, %v939_v12  ;;  %v960_v50 = vsel %vm872_vm14, 0, %v958_v29 }
  0xa1   :  { %v1408_v42 = vpop.eup %1407  ;;  %v759_v23 = vxor.u32 2147483648, %v1406_v5  ;;  %v1145_v11 = vshrl.u32 %v1144_v59, 30  ;;  %v1068_v57 = vand.u32 3, %v960_v50 }
  0xa2   :  { %v756_v21 = vxor.u32 2147483648, %v1408_v42  ;;  %vm1346_vm11 = vcmp.lt.s32.totalorder %v1345_v55, 0 }
  0xa3   :  { %v760_v20 = vsel %vm758_vm6, %v759_v23, %v1408_v42  ;;  %v863_v49 = vsel %vm861_vm7, %v759_v23, %v1408_v42  ;;  %v942_v2 = vsel %vm1346_vm11, 0, %v1345_v55  ;;  %v1146_v63 = vshll.u32 %v1145_v11, 30 }
  0xa4   :  { %v757_v62 = vsel %vm755_vm9, %v1406_v5, %v756_v21  ;;  %v860_v6 = vsel %vm858_vm10, %v1406_v5, %v756_v21  ;;  %v943_v31 = vsub.s32 32, %v942_v2  ;;  %v944_v45 = vshll.u32 %v935_v37, %v942_v2 }
  0xa5   :  { %v761_v8 = vsel %vm754_vm8, %v757_v62, %v760_v20  ;;  %v864_v46 = vsel %vm857_vm5, %v860_v6, %v863_v49  ;;  %v947_v54 = vsub.s32 4294967266, %v942_v2  ;;  %v1147_v30 = vsub.s32 %v1143_v60, %v1146_v63 }
  0xa6   :  { %v762_v14 = vsel %vm751_vm12, nan, %v761_v8  ;;  %v865_v26 = vsel %vm751_vm12, nan, %v864_v46  ;;  %v945_v16 = vshrl.u32 %v927_v61, %v943_v31  ;;  %v964_v37 = vadd.s32 3, %v960_v50 }
  0xa7   :  { %867 = vst [vmem:[#allocation5 + $0x38] sm:$0xff] %v762_v14  ;;  %869 = vst [vmem:[#allocation5 + $0x40] sm:$0xff] %v865_v26  ;;  %v948_v4 = vadd.s32 127, %v947_v54  ;;  %v1149_v35 = vsub.s32 0, %v1147_v30  ;;  %v1169_v47 = vsub.s32 4, %v1145_v11  ;;  %vm1073_vm2 = vcmp.eq.s32.totalorder %v1068_v57, 2 }
  0xa8   :  { %v946_v7 = vor.u32 %v945_v16, %v944_v45  ;;  %v965_v56 = vand.u32 3, %v964_v37  ;;  %vm1069_vm5 = vcmp.lt.s32.totalorder %v1068_v57, 2  ;;  %vm1070_vm6 = vcmp.eq.s32.totalorder %v1068_v57, 0 }
  0xa9   :  { %v949_v28 = vshll.u32 %v948_v4, 23  ;;  %v1352_v25 = vmin.u32 %v1149_v35, %v1147_v30  ;;  %v1170_v3 = vsel %vm1085_vm3, %v1169_v47, %v1145_v11  ;;  %vm963_vm8 = vweird.f32 %v1595_v13 }
  0xaa   :  { %v953_v0 = vcvt.s32.f32 %v946_v7  ;;  %vm970_vm0 = vcmp.eq.s32.totalorder %v965_v56, 2  ;;  %vm967_vm4 = vcmp.eq.s32.totalorder %v965_v56, 0  ;;  %vm966_vm7 = vcmp.lt.s32.totalorder %v965_v56, 2 }
  0xab   :  { %v950_v32 = vor.u32 4788187, %v949_v28  ;;  %v1151_v41 = vclz %v1352_v25  ;;  %v1172_v62 = vsel %vm1992_vm1, 0, %v1170_v3 }
  0xac   :  { %v1280_v8 = vand.u32 3, %v1172_v62 }
  0xad   :  { %v951_v22 = vand.u32 2147483647, %v950_v32  ;;  %v1353_v39 = vadd.s32 4294967294, %v1151_v41 }
  0xae   :  { %vm1285_vm10 = vcmp.eq.s32.totalorder %v1280_v8, 2  ;;  %vm1282_vm12 = vcmp.eq.s32.totalorder %v1280_v8, 0 }
  0xaf   :  { %v954_v1 = vmul.f32 %v953_v0, %v951_v22  ;;  %vm1354_vm15 = vcmp.lt.s32.totalorder %v1353_v39, 0 }
  0xb0   :  { %v1154_v51 = vsel %vm1354_vm15, 0, %v1353_v39  ;;  %vm1175_vm15 = vweird.f32 %v1822_v48 }
  0xb1   :  { %v955_v27 = vxor.u32 2147483648, %v954_v1  ;;  %v1155_v53 = vsub.s32 32, %v1154_v51  ;;  %v1156_v38 = vshll.u32 %v1147_v30, %v1154_v51  ;;  %v1159_v52 = vsub.s32 4294967266, %v1154_v51 }
  0xb3   :  { %v956_v9 = vsel %vm873_vm13, %v955_v27, %v954_v1  ;;  %v1157_v15 = vshrl.u32 %v1139_v44, %v1155_v53  ;;  %v1160_v10 = vadd.s32 127, %v1159_v52 }
  0xb4   :  { %v959_v24 = vsel %vm872_vm14, %v1595_v13, %v956_v9  ;;  %v1176_v13 = vadd.s32 3, %v1172_v62  ;;  %vm1281_vm14 = vcmp.lt.s32.totalorder %v1280_v8, 2 }
  0xb5   :  { %1409 = vcosq.f32 %v959_v24  ;;  %v1158_v17 = vor.u32 %v1157_v15, %v1156_v38  ;;  %v1161_v36 = vshll.u32 %v1160_v10, 23 }
  0xb6   :  { %1411 = vsinq.f32 %v959_v24  ;;  %v1177_v45 = vand.u32 3, %v1176_v13 }
  0xb7   :  { %v1162_v18 = vor.u32 4788187, %v1161_v36  ;;  %v1165_v19 = vcvt.s32.f32 %v1158_v17 }
  0xb8   :  { %vm1182_vm9 = vcmp.eq.s32.totalorder %v1177_v45, 2  ;;  %vm1179_vm11 = vcmp.eq.s32.totalorder %v1177_v45, 0  ;;  %vm1178_vm13 = vcmp.lt.s32.totalorder %v1177_v45, 2 }
  0xb9   :  { %v1163_v58 = vand.u32 2147483647, %v1162_v18 }
  0xbb   :  { %v1166_v12 = vmul.f32 %v1165_v19, %v1163_v58 }
  0xbd   :  { %v1167_v60 = vxor.u32 2147483648, %v1166_v12 }
  0xbf   :  { %v1410_v33 = vpop.eup %1409  ;;  %v1168_v59 = vsel %vm1085_vm3, %v1167_v60, %v1166_v12 }
  0xc0   :  { %v1412_v43 = vpop.eup %1411  ;;  %v971_v5 = vxor.u32 2147483648, %v1410_v33  ;;  %v1171_v2 = vsel %vm1992_vm1, %v1822_v48, %v1168_v59 }
  0xc1   :  { %v968_v55 = vxor.u32 2147483648, %v1412_v43  ;;  %1413 = vcosq.f32 %v1171_v2 }
  0xc2   :  { %v972_v42 = vsel %vm970_vm0, %v971_v5, %v1412_v43  ;;  %v1075_v23 = vsel %vm1073_vm2, %v971_v5, %v1412_v43  ;;  %1415 = vsinq.f32 %v1171_v2 }
  0xc3   :  { %v969_v21 = vsel %vm967_vm4, %v1410_v33, %v968_v55  ;;  %v1072_v61 = vsel %vm1070_vm6, %v1410_v33, %v968_v55 }
  0xc4   :  { %v973_v20 = vsel %vm966_vm7, %v969_v21, %v972_v42  ;;  %v1076_v49 = vsel %vm1069_vm5, %v1072_v61, %v1075_v23 }
  0xc5   :  { %v974_v6 = vsel %vm963_vm8, nan, %v973_v20  ;;  %v1077_v31 = vsel %vm963_vm8, nan, %v1076_v49 }
  0xc6   :  { %1079 = vst [vmem:[#allocation5 + $0x48] sm:$0xff] %v974_v6  ;;  %1081 = vst [vmem:[#allocation5 + $0x50] sm:$0xff] %v1077_v31 }
  0xcb   :  { %v1414_v46 = vpop.eup %1413 }
  0xcc   :  { %v1416_v54 = vpop.eup %1415  ;;  %v1183_v11 = vxor.u32 2147483648, %v1414_v46 }
  0xcd   :  { %v1180_v14 = vxor.u32 2147483648, %v1416_v54 }
  0xce   :  { %v1184_v26 = vsel %vm1182_vm9, %v1183_v11, %v1416_v54  ;;  %v1287_v16 = vsel %vm1285_vm10, %v1183_v11, %v1416_v54 }
  0xcf   :  { %v1181_v4 = vsel %vm1179_vm11, %v1414_v46, %v1180_v14  ;;  %v1284_v63 = vsel %vm1282_vm12, %v1414_v46, %v1180_v14 }
  0xd0   :  { %v1185_v7 = vsel %vm1178_vm13, %v1181_v4, %v1184_v26  ;;  %v1288_v28 = vsel %vm1281_vm14, %v1284_v63, %v1287_v16 }
  0xd1   :  { %v1186_v30 = vsel %vm1175_vm15, nan, %v1185_v7  ;;  %v1289_v32 = vsel %vm1175_vm15, nan, %v1288_v28 }
  0xd2   :  { %1291 = vst [vmem:[#allocation5 + $0x58] sm:$0xff] %v1186_v30  ;;  %1293 = vst [vmem:[#allocation5 + $0x60] sm:$0xff] %v1289_v32 }
  0xd3   :  { %1450 = shalt.err (!%p1447_p12)
}
  0xd4   :  { %s1451_s22 = scalar_lea.hbm %s2021_s1, 1664 }
  0xd5   :  { %p1452_p13 = scmp.ne.s32.totalorder %s2021_s1, %s1451_s22  ;;  %p1455_p0 = scmp.lt.u32.totalorder %s1451_s22, %s2021_s1 }
  0xd7   :  { %p1457_p1 = pnand %p1455_p0, %p1452_p13 }
  0xd9   :  { %1460 = shalt.err (!%p1457_p1)
}
  0xda   :  { %s1473_s27 = smov 128   ;;  %s1474_s28 = smov 8  }
  0xdb   :  { %1305 = dma.vmem_to_hbm [thread:$0]  %s1300_s18, 1664, %s2021_s1, [#allocation4], %s1473_s27, %s1473_s27, %s1474_s28  }
  0xdc   :  { %1463 = dma.done.wait [#allocation4], 1664  }
  0xdd   :  { %1464 = vsyncadd [#allocation4], 4294965632 }
  0xde   :  { %1309 = vsyncpa [#allocation3], 1 }
  0xdf   :  { %1310 = vsyncpa [#allocation4], 1 }

</bundles_post_ra>
